<compile_context>
chip_gen: v7x
topology: tpu7x:2x2x1
jax: 0.10.0
libtpu: 0.0.40
codegen_flags: <defaults>
</compile_context>

<pallas_src>
import jax
import jax.numpy as jnp
from jax.experimental import pallas as pl
from jax.experimental.pallas import tpu as pltpu

IN_DIM = 4
OUT_DIM = 2


def _linear_lane_dense_kernel(w_ref, b_ref, x_ref, o_ref):
    """y[j, :] = sum_k W[j, k] * x_t[k, :] + b[j] for one batch tile.

    w_ref: SMEM (OUT_DIM * IN_DIM,) f32  -- PyTorch weight, row-major flattened
    b_ref: SMEM (OUT_DIM,) f32
    x_ref: VMEM (IN_DIM, TB) f32         -- features on sublanes, batch on lanes
    o_ref: VMEM (OUT_DIM, TB) f32
    """
    x = x_ref[...]                                        # (IN_DIM, TB) f32
    for j in range(OUT_DIM):                              # unrolled at trace time
        acc = x[0:1, :] * w_ref[j * IN_DIM + 0]           # (1, TB) scalar-bcast VPU mul
        for k in range(1, IN_DIM):
            acc = acc + x[k:k + 1, :] * w_ref[j * IN_DIM + k]
        o_ref[j:j + 1, :] = acc + b_ref[j]


def logistic_regression_forward(x, weight, bias, *, batch_tile=32768):
    """x: (B, 4) f32; weight: (2, 4) f32 (PyTorch layout); bias: (2,) f32 -> (B, 2) f32.

    NOTE: for a handful of rows, plain XLA `x @ weight.T + bias` beats any kernel
    launch; this Pallas path is the large-batch path (kept callable at any B).
    """
    B, in_dim = x.shape
    assert in_dim == IN_DIM and weight.shape == (OUT_DIM, IN_DIM)

    # Layout plumbing stays in the wrapper: put batch onto lanes.
    x_t = x.T.astype(jnp.float32)                         # (IN_DIM, B)
    w_flat = weight.reshape(-1).astype(jnp.float32)       # (8,) scalars -> SMEM
    b = bias.astype(jnp.float32)                          # (2,) scalars -> SMEM

    # Lane tile: full extent when B is small, otherwise a multiple-of-128 tile
    # (the (8,128) rule: last block dim must be a multiple of 128 or the full dim).
    tb = min(batch_tile, B)
    if tb < B:
        tb = max(128, (tb // 128) * 128)
    grid = (pl.cdiv(B, tb),)

    y_t = pl.pallas_call(
        _linear_lane_dense_kernel,
        out_shape=jax.ShapeDtypeStruct((OUT_DIM, B), jnp.float32),
        grid=grid,
        in_specs=[
            pl.BlockSpec(memory_space=pltpu.MemorySpace.SMEM),   # weight scalars
            pl.BlockSpec(memory_space=pltpu.MemorySpace.SMEM),   # bias scalars
            pl.BlockSpec((IN_DIM, tb), lambda i: (0, i)),        # lane-dense x tile
        ],
        out_specs=pl.BlockSpec((OUT_DIM, tb), lambda i: (0, i)),
        compiler_params=pltpu.CompilerParams(
            dimension_semantics=("parallel",),        # both TCs on v7x
            vmem_limit_bytes=32 * 1024 * 1024,        # tiles are KB–MB; safe everywhere
        ),
    )(w_flat, b, x_t)

    return y_t.T                                      # (B, OUT_DIM)


if __name__ == "__main__":
    key = jax.random.PRNGKey(0)
    kx, kw, kb = jax.random.split(key, 3)

    # PyTorch Linear(4, 2) default init: U(-1/sqrt(in_features), +1/sqrt(in_features)).
    bound = 1.0 / (IN_DIM ** 0.5)
    weight = jax.random.uniform(kw, (OUT_DIM, IN_DIM), jnp.float32, -bound, bound)
    bias = jax.random.uniform(kb, (OUT_DIM,), jnp.float32, -bound, bound)

    # Small, deterministic shapes:
    #   (a) multi-step grid path: B=256, tile=128 -> 2 grid steps, lane-dense stores.
    #   (b) tiny-batch full-extent path: B=8, single block.
    for B, tb in ((256, 128), (8, 128)):
        x = jax.random.normal(kx, (B, IN_DIM), jnp.float32)
        out = logistic_regression_forward(x, weight, bias, batch_tile=tb)
        out = jax.block_until_ready(out)
        ref = x @ weight.T + bias
        assert out.shape == (B, OUT_DIM)
        assert jnp.allclose(out, ref, atol=1e-5, rtol=1e-5)

    print("KERNEL_OK")
</pallas_src>

<mosaic_0001>
module attributes {stable_mosaic.version = 11 : i64} {
  func.func @_linear_lane_dense_kernel(%arg0: i32, %arg1: memref<8xf32, #tpu.memory_space<smem>>, %arg2: memref<2xf32, #tpu.memory_space<smem>>, %arg3: memref<4x128xf32, #tpu.memory_space<vmem>>, %arg4: memref<2x128xf32, #tpu.memory_space<vmem>>) attributes {dimension_semantics = [#tpu.dimension_semantics<parallel>], iteration_bounds = array<i64: 2>, scalar_prefetch = 0 : i64, scratch_operands = 0 : i64, tpu.core_type = #tpu.core_type<tc>, window_params = [{transform_indices = @transform_0, window_bounds = array<i64: 8>}, {transform_indices = @transform_1, window_bounds = array<i64: 2>}, {transform_indices = @transform_2, window_bounds = array<i64: 4, 128>}, {transform_indices = @transform_3, window_bounds = array<i64: 2, 128>}]} {
    %c0 = arith.constant 0 : index
    %c0_0 = arith.constant 0 : index
    %0 = vector.load %arg3[%c0, %c0_0] : memref<4x128xf32, #tpu.memory_space<vmem>>, vector<4x128xf32>
    %1 = vector.extract_strided_slice %0 {offsets = [0, 0], sizes = [1, 128], strides = [1, 1]} : vector<4x128xf32> to vector<1x128xf32>
    %c0_1 = arith.constant 0 : index
    %2 = memref.load %arg1[%c0_1] : memref<8xf32, #tpu.memory_space<smem>>
    %3 = vector.broadcast %2 : f32 to vector<1x128xf32>
    %4 = arith.mulf %1, %3 : vector<1x128xf32>
    %5 = vector.extract_strided_slice %0 {offsets = [1, 0], sizes = [1, 128], strides = [1, 1]} : vector<4x128xf32> to vector<1x128xf32>
    %c1 = arith.constant 1 : index
    %6 = memref.load %arg1[%c1] : memref<8xf32, #tpu.memory_space<smem>>
    %7 = vector.broadcast %6 : f32 to vector<1x128xf32>
    %8 = arith.mulf %5, %7 : vector<1x128xf32>
    %9 = arith.addf %4, %8 : vector<1x128xf32>
    %10 = vector.extract_strided_slice %0 {offsets = [2, 0], sizes = [1, 128], strides = [1, 1]} : vector<4x128xf32> to vector<1x128xf32>
    %c2 = arith.constant 2 : index
    %11 = memref.load %arg1[%c2] : memref<8xf32, #tpu.memory_space<smem>>
    %12 = vector.broadcast %11 : f32 to vector<1x128xf32>
    %13 = arith.mulf %10, %12 : vector<1x128xf32>
    %14 = arith.addf %9, %13 : vector<1x128xf32>
    %15 = vector.extract_strided_slice %0 {offsets = [3, 0], sizes = [1, 128], strides = [1, 1]} : vector<4x128xf32> to vector<1x128xf32>
    %c3 = arith.constant 3 : index
    %16 = memref.load %arg1[%c3] : memref<8xf32, #tpu.memory_space<smem>>
    %17 = vector.broadcast %16 : f32 to vector<1x128xf32>
    %18 = arith.mulf %15, %17 : vector<1x128xf32>
    %19 = arith.addf %14, %18 : vector<1x128xf32>
    %c0_2 = arith.constant 0 : index
    %20 = memref.load %arg2[%c0_2] : memref<2xf32, #tpu.memory_space<smem>>
    %21 = vector.broadcast %20 : f32 to vector<1x128xf32>
    %22 = arith.addf %19, %21 : vector<1x128xf32>
    %c0_3 = arith.constant 0 : index
    %c0_4 = arith.constant 0 : index
    %23 = vector.load %arg4[%c0_3, %c0_4] : memref<2x128xf32, #tpu.memory_space<vmem>>, vector<1x128xf32>
    tpu.vector_store %arg4[%c0_3, %c0_4], %22 {strides = array<i32>} : memref<2x128xf32, #tpu.memory_space<vmem>>, vector<1x128xf32>,
    %24 = vector.extract_strided_slice %0 {offsets = [0, 0], sizes = [1, 128], strides = [1, 1]} : vector<4x128xf32> to vector<1x128xf32>
    %c4 = arith.constant 4 : index
    %25 = memref.load %arg1[%c4] : memref<8xf32, #tpu.memory_space<smem>>
    %26 = vector.broadcast %25 : f32 to vector<1x128xf32>
    %27 = arith.mulf %24, %26 : vector<1x128xf32>
    %28 = vector.extract_strided_slice %0 {offsets = [1, 0], sizes = [1, 128], strides = [1, 1]} : vector<4x128xf32> to vector<1x128xf32>
    %c5 = arith.constant 5 : index
    %29 = memref.load %arg1[%c5] : memref<8xf32, #tpu.memory_space<smem>>
    %30 = vector.broadcast %29 : f32 to vector<1x128xf32>
    %31 = arith.mulf %28, %30 : vector<1x128xf32>
    %32 = arith.addf %27, %31 : vector<1x128xf32>
    %33 = vector.extract_strided_slice %0 {offsets = [2, 0], sizes = [1, 128], strides = [1, 1]} : vector<4x128xf32> to vector<1x128xf32>
    %c6 = arith.constant 6 : index
    %34 = memref.load %arg1[%c6] : memref<8xf32, #tpu.memory_space<smem>>
    %35 = vector.broadcast %34 : f32 to vector<1x128xf32>
    %36 = arith.mulf %33, %35 : vector<1x128xf32>
    %37 = arith.addf %32, %36 : vector<1x128xf32>
    %38 = vector.extract_strided_slice %0 {offsets = [3, 0], sizes = [1, 128], strides = [1, 1]} : vector<4x128xf32> to vector<1x128xf32>
    %c7 = arith.constant 7 : index
    %39 = memref.load %arg1[%c7] : memref<8xf32, #tpu.memory_space<smem>>
    %40 = vector.broadcast %39 : f32 to vector<1x128xf32>
    %41 = arith.mulf %38, %40 : vector<1x128xf32>
    %42 = arith.addf %37, %41 : vector<1x128xf32>
    %c1_5 = arith.constant 1 : index
    %43 = memref.load %arg2[%c1_5] : memref<2xf32, #tpu.memory_space<smem>>
    %44 = vector.broadcast %43 : f32 to vector<1x128xf32>
    %45 = arith.addf %42, %44 : vector<1x128xf32>
    %c1_6 = arith.constant 1 : index
    %c0_7 = arith.constant 0 : index
    %46 = vector.load %arg4[%c1_6, %c0_7] : memref<2x128xf32, #tpu.memory_space<vmem>>, vector<1x128xf32>
    tpu.vector_store %arg4[%c1_6, %c0_7], %45 {strides = array<i32>} : memref<2x128xf32, #tpu.memory_space<vmem>>, vector<1x128xf32>,
    return
  }
  func.func @transform_0(%arg0: i32) -> i32 {
    %c0_i32 = arith.constant 0 : i32
    %c0_i32_0 = arith.constant 0 : i32
    return %c0_i32 : i32
  }
  func.func @transform_1(%arg0: i32) -> i32 {
    %c0_i32 = arith.constant 0 : i32
    %c0_i32_0 = arith.constant 0 : i32
    return %c0_i32 : i32
  }
  func.func @transform_2(%arg0: i32) -> (i32, i32) {
    %c0_i32 = arith.constant 0 : i32
    %c0_i32_0 = arith.constant 0 : i32
    return %c0_i32, %arg0 : i32, i32
  }
  func.func @transform_3(%arg0: i32) -> (i32, i32) {
    %c0_i32 = arith.constant 0 : i32
    %c0_i32_0 = arith.constant 0 : i32
    return %c0_i32, %arg0 : i32, i32
  }
}

</mosaic_0001>

<bundles_post_ra>
// kernel: tpu_custom_call.1
= control target key start
LH: loop header
LB: loop body
LE: loop exit
PB: predicated region body
PF: predicated region fallthrough
CT: control target
= control target key end

     0   :  { %8 = vsyncpa [#allocation5], 0  ;;  %s830_s0 = inlined_call_operand.hbm [shape: f32[8], index: 0, kind: input, shape index: {}]   ;;  %s831_s1 = inlined_call_operand.vmem [shape: f32[2], index: 1, kind: input, shape index: {}]   ;;  %s832_s2 = inlined_call_operand.hbm [shape: f32[4,256], index: 2, kind: input, shape index: {}]   ;;  %s833_s3 = inlined_call_operand.hbm [shape: f32[2,256], index: 3, kind: output, shape index: {}]  }
   0x1   :  { %9 = vsyncpa [#allocation6], 0 }
   0x2   :  { %10 = vsyncpa [#allocation3], 0 }
   0x3   :  { %12 = vsyncpa [#allocation3 + $0x1], 0 }
   0x4   :  { %13 = vsyncpa [#allocation4], 0 }
   0x5   :  { %15 = vsyncpa [#allocation4 + $0x1], 0  ;;  %s625_s12 = smov 0   ;;  %s627_s13 = smov 0  }
   0x6   :  { %s629_s14 = smov 0   ;;  %s631_s15 = smov 0  }
   0x7 LB: > { %s646_s16 = sadd.s32 4294967295, %s599_s15   ;;  %s376_s17 = sadd.s32 4294967294, %s599_s15   ;;  %s599_s15 = sphi %s631_s15, %s856_s15   ;;  %s595_s14 = sphi %s629_s14, %s855_s14   ;;  %s591_s13 = sphi %s627_s13, %s854_s13   ;;  %s587_s12 = sphi %s625_s12, %s853_s12  }
   0x8   : > { %p83_p0 = scmp.ne.s32.totalorder %s591_s13, %s587_s12  ;;  %p834_p1 = scmp.eq.s32.totalorder %s646_s16, 0 }
   0x9   : > { %p113_p3 = scmp.eq.s32.totalorder %s376_s17, 1  ;;  %p377_p5 = scmp.ge.s32.totalorder %s599_s15, 1 }
   0xa   : > { %p655_p4 = por %p834_p1, %p83_p0  ;;  %p120_p7 = scmp.lt.s32.totalorder %s599_s15, 3 }
   0xb   : > { %p660_p6 = por %p113_p3, %p83_p0  ;;  %s142_s23 = sshll.u32 %s831_s1, 4  ;;  %s143_s23 = int_to_ptr.vmem [resolvable:$true] %s142_s23 }
   0xc   : > { %s837_s18 = scalar_select %p655_p4, 1, 0 }
   0xd   : > { %s838_s19 = scalar_select %p660_p6, 1, 0 }
   0xe   : > { %p665_p8 = pnand %p377_p5, %p120_p7  ;;  %s676_s24 = sadd.s32 1, %s599_s15  }
   0xf   : > { %s67_s26 = ssub.s32 %s599_s15, %s676_s24  ;;  %s70_s27 = sadd.s32 1, %s595_s14 }
  0x10   : > { %p412_p10 = pneg %p665_p8  ;;  %p687_p12 = scmp.eq.s32.totalorder %s67_s26, 0 }
  0x11   : > { %s467_s4 = scalar_lea.hbm %s830_s0, 16 }
  0x12   : > { %p680_p11 = pnand %p412_p10, %p834_p1  ;;  %p468_p13 = scmp.ne.s32.totalorder %s830_s0, %s467_s4 }
  0x13   : > { %p474_p7 = scmp.lt.u32.totalorder %s467_s4, %s830_s0 }
  0x14   : > { %p469_p0 = pneg %p680_p11 }
  0x16   : > { %p470_p3 = pnand %p469_p0, %p468_p13 }
  0x18   : > { %p471_p5 = pneg %p470_p3 }
  0x1a   : > { %p476_p10 = pnand %p474_p7, %p471_p5 }
  0x1c   : > { %479 = shalt.err (!%p476_p10)
}
  0x1d   : > { %s601_s9 = smov [#allocation2]   ;;  %s480_s17 = scalar_lea.vmem %s143_s23, 16 }
  0x1e   : > { %415 = dma.hbm_to_smem (!%p680_p11), %s830_s0, 16, %s601_s9, [#allocation5]  }
  0x1f   : > { %p481_p9 = scmp.ne.s32.totalorder %s143_s23, %s480_s17  ;;  %p488_p6 = scmp.lt.s32.totalorder %s143_s23, %s143_s23 }
  0x20   : > { %p489_p13 = scmp.lt.s32.totalorder %s480_s17, %s480_s17 }
  0x21   : > { %p483_p1 = pnand %p481_p9, %p469_p0 }
  0x22   : > { %p490_p3 = por %p489_p13, %p488_p6 }
  0x23   : > { %p484_p2 = pneg %p483_p1 }
  0x25   : > { %p491_p4 = pnand %p490_p3, %p484_p2 }
  0x27   : > { %494 = shalt.err (!%p491_p4)
}
  0x28   : > { %s602_s21 = smov [#allocation7]   ;;  %p77_p1 = scmp.ne.s32.totalorder %s595_s14, %s591_s13 }
  0x29   : > { %418 = dma.vmem_to_smem (!%p680_p11), %s143_s23, 16, %s602_s21, [#allocation6]  }
  0x2a   : > { %s712_s22 = scalar_select %p687_p12, %s595_s14, %s70_s27  }
  0x2b   : > { %p78_p6 = scmp.eq.s32.totalorder %s599_s15, 0  ;;  %p429_p2 = scmp.lt.s32.totalorder %s599_s15, 2 }
  0x2c   : > { %s153_s26 = sand.u32 1, %s595_s14   ;;  %p842_p9 = scmp.eq.s32.totalorder %s646_s16, 1 }
  0x2d   : > { %p79_p4 = por %p78_p6, %p77_p1  ;;  %s381_s29 = sshll.u32 %s153_s26, 2 }
  0x2e   : > { %p721_p0 = por %p842_p9, %p77_p1  ;;  %s382_s30 = sshll.u32 %s599_s15, 6 }
  0x2f   : > { %s729_s6 = scalar_lea.hbm %s832_s2, %s382_s30  ;;  %s157_s23 = scalar_lea.vmem [#allocation8], %s381_s29 }
  0x30   : > { %s843_s25 = scalar_select %p721_p0, 1, 0 }
  0x31   : > { %s164_s27 = sshll.u32 %s157_s23, 4  ;;  %p733_p11 = pnand %p429_p2, %p79_p4  ;;  %s731_s27 = int_to_ptr.vmem [resolvable:$true] %s164_s27 }
  0x32   : > { %s154_s7 = scalar_lea.sflag [#allocation3], %s153_s26  ;;  %s495_s8 = scalar_lea.hbm %s729_s6, 64 }
  0x33   : > { %p496_p12 = scmp.ne.s32.totalorder %s729_s6, %s495_s8  ;;  %p497_p5 = pneg %p733_p11 }
  0x34   : > { %s500_s11 = scalar_lea.hbm %s832_s2, 128  ;;  %p501_p13 = scmp.lt.u32.totalorder %s729_s6, %s832_s2 }
  0x35   : > { %p498_p7 = pnand %p497_p5, %p496_p12  ;;  %p502_p3 = scmp.lt.u32.totalorder %s500_s11, %s495_s8 }
  0x36   : > { %p504_p6 = scmp.lt.u32.totalorder %s495_s8, %s729_s6 }
  0x37   : > { %p499_p10 = pneg %p498_p7  ;;  %p503_p1 = por %p502_p3, %p501_p13 }
  0x39   : > { %p505_p2 = por %p504_p6, %p503_p1 }
  0x3b   : > { %p506_p4 = pnand %p505_p2, %p499_p10 }
  0x3d   : > { %509 = shalt.err (!%p506_p4)
}
  0x3e   : > { %s510_s26 = scalar_lea.vmem %s731_s27, 64  ;;  %s603_s29 = smov [#allocation8]  }
  0x3f   : > { %p511_p9 = scmp.ne.s32.totalorder %s731_s27, %s510_s26  ;;  %s515_s30 = sshll.u32 %s603_s29, 4  ;;  %s516_s30 = int_to_ptr.vmem [resolvable:$false] %s515_s30 }
  0x40   : > { %s517_s4 = scalar_lea.vmem %s516_s30, 128  ;;  %p518_p0 = scmp.lt.s32.totalorder %s731_s27, %s516_s30 }
  0x41   : > { %p513_p12 = pnand %p511_p9, %p497_p5  ;;  %p519_p13 = scmp.lt.s32.totalorder %s517_s4, %s510_s26 }
  0x43   : > { %p514_p7 = pneg %p513_p12  ;;  %p520_p3 = por %p519_p13, %p518_p0 }
  0x45   : > { %p521_p1 = pnand %p520_p3, %p514_p7 }
  0x47   : > { %524 = shalt.err (!%p521_p1)
}
  0x48   : > { %422 = dma.hbm_to_vmem [thread:$0]  (!%p733_p11), %s729_s6, 64, %s731_s27, %s154_s7  }
  0x49   : > { %173 = sbr.rel (%p665_p8) target bundleno = 125 (0x7d), region = 32  ;;  %p845_p5 = scmp.eq.s32.totalorder (!%p665_p8), %s646_s16, 0 }
  0x50   : > { %570 = dma.done.wait (%p845_p5), [#allocation5], 16   ;;  %p846_p10 = pmov %p845_p5 }
  0x51   : > { %p847_p6 = pmov %p845_p5 }
  0x52   : > { %572 = vsyncadd (%p846_p10), [#allocation5], 4294967280 }
  0x53   : > { %574 = dma.done.wait (%p847_p6), [#allocation6], 16   ;;  %p848_p0 = pmov %p845_p5 }
  0x54   : > { %s773_s5 = sand.u32 1, %s591_s13   ;;  %p849_p8 = scmp.ne.s32.totalorder %s837_s18, 0 }
  0x55   : > { %576 = vsyncadd (%p848_p0), [#allocation6], 4294967280  ;;  %s386_s20 = sshll.u32 %s773_s5, 2  ;;  %s184_s6 = scalar_lea.sflag [#allocation3], %s773_s5 }
  0x56   : > { %s187_s23 = scalar_lea.vmem [#allocation8], %s386_s20 }
  0x57   : > { %578 = dma.done.wait (%p849_p8), %s184_s6, 64  }
  0x58   : > { %580 = vsyncadd (%p849_p8), %s184_s6, 4294967232 }
  0x59   : > { %192 = sfence }
  0x5a   : > { %s212_s27 = sld [smem:[#allocation2]]  ;;  %s388_s28 = sld [smem:[#allocation2 + $0x1]]  ;;  %v211_v0 = vld [vmem:[%s187_s23] sm:$0xf] }
  0x5b   : > { %s389_s7 = sld [smem:[#allocation2 + $0x2]]  ;;  %s390_s8 = sld [smem:[#allocation2 + $0x3]] }
  0x5c   : > { %s391_s9 = sld [smem:[#allocation2 + $0x4]]  ;;  %s392_s10 = sld [smem:[#allocation2 + $0x5]] }
  0x5d   : > { %s393_s11 = sld [smem:[#allocation2 + $0x6]]  ;;  %s394_s17 = sld [smem:[#allocation2 + $0x7]] }
  0x5e   : > { %s236_s21 = sld [smem:[#allocation7]]  ;;  %s395_s18 = sld [smem:[#allocation7 + $0x1]] }
  0x5f   : > { %s387_s26 = sshll.u32 %s773_s5, 1  ;;  %s397_s4 = sshll.u32 %s646_s16, 5 }
  0x60   : > { %v213_v1 = vstv %s212_s27  ;;  %v216_v2 = vstv %s388_s28  ;;  %s210_s29 = scalar_lea.vmem [#allocation9], %s387_s26  ;;  %s788_s23 = scalar_lea.hbm %s833_s3, %s397_s4 }
  0x61   : > { %v214_v3 = vmul.f32 %v213_v1, %v211_v0  ;;  %v217_v4 = vmul.f32 %v216_v2, %v211_v0  ;;  %v223_v5 = vstv %s389_s7  ;;  %v230_v6 = vstv %s390_s8  ;;  %s282_s30 = sshll.u32 %s210_s29, 4  ;;  %s269_s27 = scalar_lea.sflag [#allocation4], %s773_s5  ;;  %s783_s30 = int_to_ptr.vmem [resolvable:$true] %s282_s30 }
  0x62   : > { %v224_v7 = vmul.f32 %v223_v5, %v211_v0  ;;  %v231_v8 = vmul.f32 %v230_v6, %v211_v0  ;;  %v241_v10 = vstv %s391_s9  ;;  %v244_v14 = vstv %s392_s10  ;;  %s525_s28 = scalar_lea.vmem %s783_s30, 32  ;;  %p850_p2 = scmp.ne.s32.totalorder %s843_s25, 0 }
  0x63   : > { %v219_v9 = vrot.slane %v217_v4, 1  ;;  %v242_v13 = vmul.f32 %v241_v10, %v211_v0  ;;  %v245_v16 = vmul.f32 %v244_v14, %v211_v0  ;;  %v251_v17 = vstv %s393_s11  ;;  %p526_p11 = scmp.ne.s32.totalorder %s783_s30, %s525_s28  ;;  %s604_s16 = smov [#allocation9]  }
  0x64   : > { %v226_v11 = vrot.slane %v224_v7, 2  ;;  %v233_v12 = vrot.slane %v231_v8, 3  ;;  %v258_v18 = vstv %s394_s17  ;;  %v252_v19 = vmul.f32 %v251_v17, %v211_v0  ;;  %s529_s7 = sshll.u32 %s604_s16, 4  ;;  %s530_s7 = int_to_ptr.vmem [resolvable:$false] %s529_s7 }
  0x65   : > { %v221_v15 = vadd.f32 %v219_v9, %v214_v3  ;;  %v259_v20 = vmul.f32 %v258_v18, %v211_v0  ;;  %v247_v22 = vrot.slane %v245_v16, 1  ;;  %v237_v23 = vstv %s236_s21  ;;  %p527_p4 = pnand %p526_p11, %p850_p2  ;;  %s531_s8 = scalar_lea.vmem %s530_s7, 64 }
  0x66   : > { %v254_v24 = vrot.slane %v252_v19, 2  ;;  %v265_v30 = vstv %s395_s18  ;;  %p532_p12 = scmp.lt.s32.totalorder %s783_s30, %s530_s7  ;;  %p533_p7 = scmp.lt.s32.totalorder %s531_s8, %s525_s28 }
  0x67   : > { %v228_v21 = vadd.f32 %v226_v11, %v221_v15  ;;  %v249_v26 = vadd.f32 %v247_v22, %v242_v13  ;;  %v261_v27 = vrot.slane %v259_v20, 3  ;;  %p528_p9 = pneg %p527_p4 }
  0x68   : > { %p534_p13 = por %p533_p7, %p532_p12 }
  0x69   : > { %v235_v25 = vadd.f32 %v233_v12, %v228_v21  ;;  %v256_v29 = vadd.f32 %v254_v24, %v249_v26 }
  0x6a   : > { %p535_p3 = pnand %p534_p13, %p528_p9 }
  0x6b   : > { %v238_v28 = vadd.f32 %v237_v23, %v235_v25  ;;  %v263_v31 = vadd.f32 %v261_v27, %v256_v29 }
  0x6d   : > { %239 = vst [vmem:[%s210_s29] sm:$0x1] %v238_v28  ;;  %v266_v32 = vadd.f32 %v265_v30, %v263_v31 }
  0x6f   : > { %267 = vst [vmem:[%s210_s29 + $0x1] sm:$0x1] %v266_v32 }
  0x70   : > { %538 = shalt.err (!%p535_p3)
}
  0x71   : > { %s539_s5 = scalar_lea.hbm %s788_s23, 32  ;;  %s543_s11 = scalar_lea.hbm %s833_s3, 64 }
  0x72   : > { %p540_p1 = scmp.ne.s32.totalorder %s788_s23, %s539_s5  ;;  %p544_p6 = scmp.lt.u32.totalorder %s788_s23, %s833_s3 }
  0x73   : > { %p545_p0 = scmp.lt.u32.totalorder %s543_s11, %s539_s5  ;;  %p547_p11 = scmp.lt.u32.totalorder %s539_s5, %s788_s23 }
  0x74   : > { %p541_p5 = pnand %p540_p1, %p850_p2 }
  0x75   : > { %p546_p8 = por %p545_p0, %p544_p6 }
  0x76   : > { %p542_p10 = pneg %p541_p5 }
  0x77   : > { %p548_p4 = por %p547_p11, %p546_p8 }
  0x79   : > { %p549_p9 = pnand %p548_p4, %p542_p10 }
  0x7b   : > { %552 = shalt.err (!%p549_p9)
}
  0x7c   : > { %410 = dma.vmem_to_hbm [thread:$0]  (%p850_p2), %s783_s30, 32, %s788_s23, %s269_s27  }
  0x7d PF: > { %s294_s18 = sand.u32 1, %s587_s12   ;;  %p851_p12 = scmp.ne.s32.totalorder %s838_s19, 0 }
  0x7e   : > { %p852_p7 = scmp.ge.s32.totalorder %s599_s15, 2  ;;  %s295_s26 = scalar_lea.sflag [#allocation4], %s294_s18 }
  0x80   : > { %p424_p13 = pnand %p852_p7, %p851_p12 }
  0x82   : > { %582 = dma.done.wait (!%p424_p13), %s295_s26, 32  }
  0x83   : > { %584 = vsyncadd (!%p424_p13), %s295_s26, 4294967264  ;;  %p18_p3 = scmp.ge.s32.totalorder %s676_s24, 4   ;;  %s853_s12 = smov %s591_s13 }
  0x84   : > { %s854_s13 = smov %s595_s14  ;;  %s855_s14 = smov %s712_s22 }
  0x85   : > { %s856_s15 = smov %s676_s24  ;;  %20 = sbr.rel (!%p18_p3) target bundleno = 7 (0x7), region = 87 }
  0x8c   :  { %300 = vsyncpa [#allocation3], 1 }
  0x8d   :  { %302 = vsyncpa [#allocation3 + $0x1], 1 }
  0x8e   :  { %303 = vsyncpa [#allocation4], 1 }
  0x8f   :  { %305 = vsyncpa [#allocation4 + $0x1], 1 }
  0x90   :  { %306 = vsyncpa [#allocation5], 1 }
  0x91   :  { %308 = vsyncpa [#allocation5 + $0x1], 1 }
  0x92   :  { %309 = vsyncpa [#allocation6], 1 }
  0x93   :  { %311 = vsyncpa [#allocation6 + $0x1], 1 }

</bundles_post_ra>
